<compile_context>
chip_gen: v6e
topology: v6e:2x2x1
jax: 0.10.0
libtpu: 0.0.40
codegen_flags: <defaults>
</compile_context>

<pallas_src>
import math
from functools import partial

import jax
import jax.numpy as jnp
from jax.experimental import pallas as pl
from jax.experimental.pallas import tpu as pltpu


def node_features_kernel(x_ref, w_ref, table_ref, deg_ref, o_ref):
    # x_ref:     (TN, F)          node-feature tile
    # w_ref:     (F, D)           encoder weight ([F, D] = PyTorch [D, F]^T), VMEM-resident
    # table_ref: (num_deg_pad, D) degree-embedding table with bias folded in, VMEM-resident
    # deg_ref:   (TN, 1)          int32 degree index per node in this tile
    # o_ref:     (TN, D)
    acc = jnp.dot(x_ref[...], w_ref[...], preferred_element_type=jnp.float32)

    # In-kernel embedding lookup: one-hot(deg) @ table. Avoids materializing an
    # [N, D] gathered embedding in HBM (pure extra traffic on a mem-bound op)
    # and runs on the MXU (contraction dim padded to a multiple of 128).
    tn = deg_ref.shape[0]
    num_deg_pad = table_ref.shape[0]
    iota = jax.lax.broadcasted_iota(jnp.int32, (tn, num_deg_pad), 1)
    one_hot = (deg_ref[...] == iota).astype(jnp.float32)
    acc = acc + jnp.dot(one_hot, table_ref[...], preferred_element_type=jnp.float32)

    o_ref[...] = acc.astype(o_ref.dtype)


@partial(jax.jit, static_argnames=("tile_n",))
def node_features_forward(x, edge_index, w_enc_t, b_enc, degree_table, *, tile_n=512):
    """x: [N, F] f32, edge_index: [2, E] i32, w_enc_t: [F, D] f32, b_enc: [D] f32,
    degree_table: [num_degree, D] f32.  Returns [N, D] f32."""
    N, F = x.shape
    D = w_enc_t.shape[1]
    num_degree = degree_table.shape[0]

    # --- glue: node degree via scatter-add over col (int32 accumulation) ---
    # TODO(synk): data-dependent scatter has no clean single-kernel Pallas form; kept as XLA glue.
    col = edge_index[1]
    deg = jnp.zeros((N,), jnp.int32).at[col].add(1)
    # NOTE: PyTorch nn.Embedding would raise on an out-of-range degree; we clamp instead.
    deg_idx = jnp.clip(deg, 0, num_degree - 1).astype(jnp.int32)

    # Fold bias into the degree table:  x@W + b + table[d]  ==  x@W + (table + b)[d]
    table_b = degree_table.astype(jnp.float32) + b_enc.reshape(1, D).astype(jnp.float32)

    # Pad the degree-vocab axis to a multiple of 128 so the in-kernel one-hot
    # contraction dim is lane-dense. Clamped deg_idx never selects padded rows.
    deg_vocab_pad = ((num_degree + 127) // 128) * 128
    if deg_vocab_pad != num_degree:
        table_b = jnp.pad(table_b, ((0, deg_vocab_pad - num_degree), (0, 0)))

    # --- remainder handling: pad N up to a multiple of tile_n ---
    n_tiles = pl.cdiv(N, tile_n)
    n_pad = n_tiles * tile_n
    if n_pad != N:
        x_in = jnp.pad(x, ((0, n_pad - N), (0, 0)))
        deg_in = jnp.pad(deg_idx, (0, n_pad - N))
    else:
        x_in, deg_in = x, deg_idx
    deg_in = deg_in.reshape(n_pad, 1)

    # VMEM budget: double-buffered (x, deg, out) tiles + resident weight/table + headroom.
    per_step_bytes = tile_n * (F + 1 + D) * 4
    resident_bytes = (F * D + deg_vocab_pad * D) * 4
    vmem_bytes = min(max(4 * per_step_bytes + 2 * resident_bytes + (8 << 20), 32 << 20),
                     64 << 20)  # stay within v7x's 64 MiB physical VMEM

    out = pl.pallas_call(
        node_features_kernel,
        out_shape=jax.ShapeDtypeStruct((n_pad, D), x.dtype),
        grid_spec=pltpu.PrefetchScalarGridSpec(
            num_scalar_prefetch=0,
            grid=(n_tiles,),
            in_specs=[
                pl.BlockSpec((tile_n, F), lambda i: (i, 0)),           # x tile
                pl.BlockSpec((F, D), lambda i: (0, 0)),                # weight (constant block)
                pl.BlockSpec((deg_vocab_pad, D), lambda i: (0, 0)),    # degree table + bias (constant)
                pl.BlockSpec((tile_n, 1), lambda i: (i, 0)),           # degree indices tile
            ],
            out_specs=pl.BlockSpec((tile_n, D), lambda i: (i, 0)),
        ),
        compiler_params=pltpu.CompilerParams(
            dimension_semantics=("parallel",),   # node axis shards across TCs on v7x
            vmem_limit_bytes=vmem_bytes),
    )(x_in, w_enc_t.astype(jnp.float32), table_b, deg_in)

    return out[:N]


def init_node_features_params(key, feature_num, embedding_dim, num_degree, layer=2):
    """Matches init_params(): Linear.weight ~ N(0, 0.02/sqrt(layer)), bias = 0,
    Embedding.weight ~ N(0, 0.02). (init_params overwrites the padding row too,
    matching the PyTorch module's effective forward behaviour.)"""
    k_w, k_e = jax.random.split(key)
    std_lin = 0.02 / math.sqrt(layer)
    # PyTorch Linear weight is [D, F]; keep it pre-transposed as [F, D] for the kernel.
    w_enc_t = jax.random.normal(k_w, (feature_num, embedding_dim), jnp.float32) * std_lin
    b_enc = jnp.zeros((embedding_dim,), jnp.float32)
    degree_table = jax.random.normal(k_e, (num_degree, embedding_dim), jnp.float32) * 0.02
    return w_enc_t, b_enc, degree_table


if __name__ == "__main__":
    key = jax.random.PRNGKey(0)
    k_params, k_x, k_edges = jax.random.split(key, 3)

    N = 500            # nodes (not a multiple of tile_n -> exercises remainder path)
    F = 128            # feature_num  (lane-dense)
    D = 128            # embedding_dim (lane-dense output)
    NUM_DEGREE = 64    # degree vocab size
    E = 2000           # edges
    TILE_N = 512

    w_enc_t, b_enc, degree_table = init_node_features_params(k_params, F, D, NUM_DEGREE, layer=2)

    x = jax.random.normal(k_x, (N, F), jnp.float32)
    edge_index = jax.random.randint(k_edges, (2, E), 0, N, dtype=jnp.int32)

    out = node_features_forward(x, edge_index, w_enc_t, b_enc, degree_table, tile_n=TILE_N)
    out = jax.block_until_ready(out)

    # reference check in plain JAX
    col = edge_index[1]
    deg = jnp.zeros((N,), jnp.int32).at[col].add(1)
    deg_idx = jnp.clip(deg, 0, NUM_DEGREE - 1)
    ref = x @ w_enc_t + b_enc[None, :] + degree_table[deg_idx]

    assert out.shape == (N, D)
    assert jnp.allclose(out, ref, atol=1e-4, rtol=1e-4), "mismatch vs reference"

    print("KERNEL_OK")
</pallas_src>

<mosaic_0001>
module attributes {stable_mosaic.version = 11 : i64} {
  func.func private @main(%arg0: i32) attributes {dimension_semantics = [#tpu.dimension_semantics<core_parallel>], iteration_bounds = array<i64: 2>, tpu.core_type = #tpu.core_type<sc_scalar_subcore>, window_params = []} {
    return
  }
}

module attributes {stable_mosaic.version = 11 : i64} {
  func.func private @main(%arg0: i32) attributes {dimension_semantics = [#tpu.dimension_semantics<core_parallel>], iteration_bounds = array<i64: 2>, tpu.core_type = #tpu.core_type<sc_scalar_subcore>, window_params = []} {
    return
  }
}

module attributes {stable_mosaic.version = 11 : i64} {
  func.func @node_features_kernel(%arg0: i32, %arg1: memref<512x128xf32, #tpu.memory_space<vmem>>, %arg2: memref<128x128xf32, #tpu.memory_space<vmem>>, %arg3: memref<128x128xf32, #tpu.memory_space<vmem>>, %arg4: memref<512x1xi32, #tpu.memory_space<vmem>>, %arg5: memref<512x128xf32, #tpu.memory_space<vmem>>) attributes {dimension_semantics = [#tpu.dimension_semantics<parallel>], iteration_bounds = array<i64: 1>, scalar_prefetch = 0 : i64, scratch_operands = 0 : i64, tpu.core_type = #tpu.core_type<tc>, window_params = [{transform_indices = @transform_0, window_bounds = array<i64: 512, 128>}, {pipeline_mode = #tpu.pipeline_mode<synchronous>, transform_indices = @transform_1, window_bounds = array<i64: 128, 128>}, {pipeline_mode = #tpu.pipeline_mode<synchronous>, transform_indices = @transform_2, window_bounds = array<i64: 128, 128>}, {transform_indices = @transform_3, window_bounds = array<i64: 512, 1>}, {transform_indices = @transform_4, window_bounds = array<i64: 512, 128>}]} {
    %c0 = arith.constant 0 : index
    %c0_0 = arith.constant 0 : index
    %0 = vector.load %arg1[%c0, %c0_0] : memref<512x128xf32, #tpu.memory_space<vmem>>, vector<512x128xf32>
    %c0_1 = arith.constant 0 : index
    %c0_2 = arith.constant 0 : index
    %1 = vector.load %arg2[%c0_1, %c0_2] : memref<128x128xf32, #tpu.memory_space<vmem>>, vector<128x128xf32>
    %cst = arith.constant dense<0.000000e+00> : vector<512x128xf32>
    %2 = tpu.matmul %0, %1, %cst {dimension_numbers = #tpu.dot_dimension_numbers<[1], [0], [0], [1], [0, 0, 1, 1], [], []>} : vector<512x128xf32>, vector<128x128xf32>, vector<512x128xf32> -> vector<512x128xf32>
    %3 = tpu.iota {dimensions = array<i32: 1>} : vector<512x128xi32>
    %c0_3 = arith.constant 0 : index
    %c0_4 = arith.constant 0 : index
    %4 = vector.load %arg4[%c0_3, %c0_4] : memref<512x1xi32, #tpu.memory_space<vmem>>, vector<512x1xi32>
    %5 = vector.broadcast %4 : vector<512x1xi32> to vector<512x128xi32>
    %6 = arith.cmpi eq, %5, %3 : vector<512x128xi32>
    %7 = arith.extui %6 : vector<512x128xi1> to vector<512x128xi32>
    %8 = arith.sitofp %7 : vector<512x128xi32> to vector<512x128xf32>
    %c0_5 = arith.constant 0 : index
    %c0_6 = arith.constant 0 : index
    %9 = vector.load %arg3[%c0_5, %c0_6] : memref<128x128xf32, #tpu.memory_space<vmem>>, vector<128x128xf32>
    %cst_7 = arith.constant dense<0.000000e+00> : vector<512x128xf32>
    %10 = tpu.matmul %8, %9, %cst_7 {dimension_numbers = #tpu.dot_dimension_numbers<[1], [0], [0], [1], [0, 0, 1, 1], [], []>} : vector<512x128xf32>, vector<128x128xf32>, vector<512x128xf32> -> vector<512x128xf32>
    %11 = arith.addf %2, %10 : vector<512x128xf32>
    %c0_8 = arith.constant 0 : index
    %c0_9 = arith.constant 0 : index
    %12 = vector.load %arg5[%c0_8, %c0_9] : memref<512x128xf32, #tpu.memory_space<vmem>>, vector<512x128xf32>
    tpu.vector_store %arg5[%c0_8, %c0_9], %11 {strides = array<i32>} : memref<512x128xf32, #tpu.memory_space<vmem>>, vector<512x128xf32>,
    return
  }
  func.func @transform_0(%arg0: i32) -> (i32, i32) {
    %c0_i32 = arith.constant 0 : i32
    %c0_i32_0 = arith.constant 0 : i32
    return %arg0, %c0_i32 : i32, i32
  }
  func.func @transform_1(%arg0: i32) -> (i32, i32) {
    %c0_i32 = arith.constant 0 : i32
    %c0_i32_0 = arith.constant 0 : i32
    %c0_i32_1 = arith.constant 0 : i32
    return %c0_i32, %c0_i32_0 : i32, i32
  }
  func.func @transform_2(%arg0: i32) -> (i32, i32) {
    %c0_i32 = arith.constant 0 : i32
    %c0_i32_0 = arith.constant 0 : i32
    %c0_i32_1 = arith.constant 0 : i32
    return %c0_i32, %c0_i32_0 : i32, i32
  }
  func.func @transform_3(%arg0: i32) -> (i32, i32) {
    %c0_i32 = arith.constant 0 : i32
    %c0_i32_0 = arith.constant 0 : i32
    return %arg0, %c0_i32 : i32, i32
  }
  func.func @transform_4(%arg0: i32) -> (i32, i32) {
    %c0_i32 = arith.constant 0 : i32
    %c0_i32_0 = arith.constant 0 : i32
    return %arg0, %c0_i32 : i32, i32
  }
}

</mosaic_0001>

<bundles_post_ra>
// kernel: node_features_forward.1
= control target key start
LH: loop header
LB: loop body
LE: loop exit
PB: predicated region body
PF: predicated region fallthrough
CT: control target
= control target key end

     0   :  { %v1949_v0 = vmov 0   ;;  %s2880_s3 = inlined_call_operand.vmem [shape: s32[512,1], index: 3, kind: input, shape index: {}]   ;;  %s2881_s1 = inlined_call_operand.vmem [shape: f32[128,128], index: 1, kind: input, shape index: {}]   ;;  %s2882_s2 = inlined_call_operand.vmem [shape: f32[128,128], index: 2, kind: input, shape index: {}]   ;;  %s2883_s0 = inlined_call_operand.vmem [shape: f32[512,128], index: 0, kind: input, shape index: {}]   ;;  %s2884_s4 = inlined_call_operand.vmem [shape: f32[512,128], index: 4, kind: output, shape index: {}]  }
   0x1   :  { %1948 = vset.pattern.permute.xlu1 %v1949_v0  ;;  %1947 = vset.pattern.permute.xlu0 %v1949_v0  ;;  %v101_v1 = vld [vmem:[%s2880_s3 + $0x10] sm:$0xff]  ;;  %v99_v2 = vld [vmem:[%s2880_s3] sm:$0xff]  ;;  %v102_v3 = vld [vmem:[%s2880_s3 + $0x18] sm:$0xff] }
   0x2   :  { %170 = vperm.xlu1 %1948, %v101_v1   ;;  %164 = vperm.xlu0 %1947, %v99_v2   ;;  %v100_v4 = vld [vmem:[%s2880_s3 + $0x8] sm:$0xff]  ;;  %v103_v6 = vld [vmem:[%s2880_s3 + $0x20] sm:$0xff]  ;;  %v106_v7 = vld [vmem:[%s2880_s3 + $0x38] sm:$0xff] }
   0x3   :  { %v104_v5 = vld [vmem:[%s2880_s3 + $0x28] sm:$0xff]  ;;  %v105_v8 = vld [vmem:[%s2880_s3 + $0x30] sm:$0xff]  ;;  %v107_v10 = vld [vmem:[%s2880_s3 + $0x40] sm:$0xff] }
   0x4   :  { %v108_v9 = vld [vmem:[%s2880_s3 + $0x48] sm:$0xff]  ;;  %v96_v11 = vld [vmem:[%s2881_s1 + $0x78] sm:$0xff]  ;;  %v95_v13 = vld [vmem:[%s2881_s1 + $0x70] sm:$0xff] }
   0x5   :  { %v562_v12 = vld [vmem:[%s2882_s2 + $0x78] sm:$0xff]  ;;  %v561_v14 = vld [vmem:[%s2882_s2 + $0x70] sm:$0xff]  ;;  %1817 = vmatprep.subr.mxu1 %v96_v11  ;;  %v94_v17 = vld [vmem:[%s2881_s1 + $0x68] sm:$0xff] }
   0x6   :  { %173 = vperm.xlu1 %1948, %v102_v3   ;;  %167 = vperm.xlu0 %1947, %v100_v4   ;;  %v110_v15 = vld [vmem:[%s2880_s3 + $0x58] sm:$0xff]  ;;  %v109_v16 = vld [vmem:[%s2880_s3 + $0x50] sm:$0xff]  ;;  %v560_v18 = vld [vmem:[%s2882_s2 + $0x68] sm:$0xff] }
   0x7   :  { %1689 = vmatprep.subr.mxu0 %v562_v12  ;;  %1818 = vmatpush3.msra.mxu1 %v96_v11  ;;  %v112_v19 = vld [vmem:[%s2880_s3 + $0x68] sm:$0xff]  ;;  %v111_v20 = vld [vmem:[%s2880_s3 + $0x60] sm:$0xff]  ;;  %v92_v23 = vld [vmem:[%s2881_s1 + $0x58] sm:$0xff] }
   0x8   :  { %1690 = vmatpush3.msra.mxu0 %v562_v12  ;;  %1819 = vmatprep.subr.mxu1 %v95_v13  ;;  %v93_v21 = vld [vmem:[%s2881_s1 + $0x60] sm:$0xff]  ;;  %v558_v24 = vld [vmem:[%s2882_s2 + $0x58] sm:$0xff]  ;;  %v113_v26 = vld [vmem:[%s2880_s3 + $0x70] sm:$0xff] }
   0x9   :  { %1691 = vmatprep.subr.mxu0 %v561_v14  ;;  %1820 = vmatpush3.msra.mxu1 %v95_v13  ;;  %v559_v22 = vld [vmem:[%s2882_s2 + $0x60] sm:$0xff]  ;;  %v114_v25 = vld [vmem:[%s2880_s3 + $0x78] sm:$0xff]  ;;  %v91_v27 = vld [vmem:[%s2881_s1 + $0x50] sm:$0xff] }
   0xa   :  { %179 = vperm.xlu1 %1948, %v104_v5   ;;  %176 = vperm.xlu0 %1947, %v103_v6   ;;  %v557_v28 = vld [vmem:[%s2882_s2 + $0x50] sm:$0xff]  ;;  %v116_v29 = vld [vmem:[%s2880_s3 + $0x88] sm:$0xff]  ;;  %v115_v30 = vld [vmem:[%s2880_s3 + $0x80] sm:$0xff] }
   0xb   :  { %1692 = vmatpush3.msra.mxu0 %v561_v14  ;;  %1821 = vmatprep.subr.mxu1 %v94_v17  ;;  %v90_v31 = vld [vmem:[%s2881_s1 + $0x48] sm:$0xff]  ;;  %v89_v33 = vld [vmem:[%s2881_s1 + $0x40] sm:$0xff]  ;;  %v118_v35 = vld [vmem:[%s2880_s3 + $0x98] sm:$0xff] }
   0xc   :  { %1693 = vmatprep.subr.mxu0 %v560_v18  ;;  %1822 = vmatpush3.msra.mxu1 %v94_v17  ;;  %v556_v32 = vld [vmem:[%s2882_s2 + $0x48] sm:$0xff]  ;;  %v555_v34 = vld [vmem:[%s2882_s2 + $0x40] sm:$0xff]  ;;  %v117_v36 = vld [vmem:[%s2880_s3 + $0x90] sm:$0xff] }
   0xd   :  { %1694 = vmatpush3.msra.mxu0 %v560_v18  ;;  %1823 = vmatprep.subr.mxu1 %v93_v21  ;;  %v88_v37 = vld [vmem:[%s2881_s1 + $0x38] sm:$0xff]  ;;  %v120_v39 = vld [vmem:[%s2880_s3 + $0xa8] sm:$0xff]  ;;  %v119_v40 = vld [vmem:[%s2880_s3 + $0xa0] sm:$0xff] }
   0xe   :  { %185 = vperm.xlu1 %1948, %v106_v7   ;;  %182 = vperm.xlu0 %1947, %v105_v8   ;;  %v554_v38 = vld [vmem:[%s2882_s2 + $0x38] sm:$0xff]  ;;  %v87_v41 = vld [vmem:[%s2881_s1 + $0x30] sm:$0xff]  ;;  %v86_v43 = vld [vmem:[%s2881_s1 + $0x28] sm:$0xff] }
   0xf   :  { %1695 = vmatprep.subr.mxu0 %v559_v22  ;;  %1824 = vmatpush3.msra.mxu1 %v93_v21  ;;  %v553_v42 = vld [vmem:[%s2882_s2 + $0x30] sm:$0xff]  ;;  %v552_v44 = vld [vmem:[%s2882_s2 + $0x28] sm:$0xff]  ;;  %v122_v45 = vld [vmem:[%s2880_s3 + $0xb8] sm:$0xff] }
  0x10   :  { %1696 = vmatpush3.msra.mxu0 %v559_v22  ;;  %1825 = vmatprep.subr.mxu1 %v92_v23  ;;  %v121_v46 = vld [vmem:[%s2880_s3 + $0xb0] sm:$0xff]  ;;  %v85_v47 = vld [vmem:[%s2881_s1 + $0x20] sm:$0xff]  ;;  %v124_v49 = vld [vmem:[%s2880_s3 + $0xc8] sm:$0xff] }
  0x11   :  { %1697 = vmatprep.subr.mxu0 %v558_v24  ;;  %1826 = vmatpush3.msra.mxu1 %v92_v23  ;;  %v551_v48 = vld [vmem:[%s2882_s2 + $0x20] sm:$0xff]  ;;  %v84_v51 = vld [vmem:[%s2881_s1 + $0x18] sm:$0xff]  ;;  %v83_v53 = vld [vmem:[%s2881_s1 + $0x10] sm:$0xff] }
  0x12   :  { %191 = vperm.xlu1 %1948, %v108_v9   ;;  %188 = vperm.xlu0 %1947, %v107_v10   ;;  %v123_v50 = vld [vmem:[%s2880_s3 + $0xc0] sm:$0xff]  ;;  %v550_v52 = vld [vmem:[%s2882_s2 + $0x18] sm:$0xff]  ;;  %v549_v54 = vld [vmem:[%s2882_s2 + $0x10] sm:$0xff] }
  0x13   :  { %1698 = vmatpush3.msra.mxu0 %v558_v24  ;;  %1827 = vmatprep.subr.mxu1 %v91_v27  ;;  %v126_v55 = vld [vmem:[%s2880_s3 + $0xd8] sm:$0xff]  ;;  %v125_v56 = vld [vmem:[%s2880_s3 + $0xd0] sm:$0xff]  ;;  %v82_v57 = vld [vmem:[%s2881_s1 + $0x8] sm:$0xff] }
  0x14   :  { %1699 = vmatprep.subr.mxu0 %v557_v28  ;;  %1828 = vmatpush3.msra.mxu1 %v91_v27  ;;  %v548_v58 = vld [vmem:[%s2882_s2 + $0x8] sm:$0xff]  ;;  %v127_v60 = vld [vmem:[%s2880_s3 + $0xe0] sm:$0xff]  ;;  %v130_v1 = vld [vmem:[%s2880_s3 + $0xf8] sm:$0xff] }
  0x15   :  { %1700 = vmatpush3.msra.mxu0 %v557_v28  ;;  %1829 = vmatprep.subr.mxu1 %v90_v31  ;;  %v128_v59 = vld [vmem:[%s2880_s3 + $0xe8] sm:$0xff]  ;;  %v81_v61 = vld [vmem:[%s2881_s1] sm:$0xff]  ;;  %v129_v2 = vld [vmem:[%s2880_s3 + $0xf0] sm:$0xff] }
  0x16   :  { %197 = vperm.xlu1 %1948, %v110_v15   ;;  %194 = vperm.xlu0 %1947, %v109_v16   ;;  %v17_v62 = vld [vmem:[%s2883_s0] sm:$0xff]  ;;  %v18_v0 = vld [vmem:[%s2883_s0 + $0x8] sm:$0xff]  ;;  %v19_v3 = vld [vmem:[%s2883_s0 + $0x10] sm:$0xff] }
  0x17   :  { %1701 = vmatprep.subr.mxu0 %v556_v32  ;;  %1830 = vmatpush3.msra.mxu1 %v90_v31  ;;  %v547_v63 = vld [vmem:[%s2882_s2] sm:$0xff]  ;;  %v20_v4 = vld [vmem:[%s2883_s0 + $0x18] sm:$0xff]  ;;  %v132_v5 = vld [vmem:[%s2880_s3 + $0x108] sm:$0xff] }
  0x18   :  { %1702 = vmatpush3.msra.mxu0 %v556_v32  ;;  %1831 = vmatprep.subr.mxu1 %v89_v33  ;;  %v131_v6 = vld [vmem:[%s2880_s3 + $0x100] sm:$0xff]  ;;  %v22_v8 = vld [vmem:[%s2883_s0 + $0x28] sm:$0xff]  ;;  %v134_v9 = vld [vmem:[%s2880_s3 + $0x118] sm:$0xff] }
  0x19   :  { %1703 = vmatprep.subr.mxu0 %v555_v34  ;;  %1832 = vmatpush3.msra.mxu1 %v89_v33  ;;  %v21_v7 = vld [vmem:[%s2883_s0 + $0x20] sm:$0xff]  ;;  %v133_v10 = vld [vmem:[%s2880_s3 + $0x110] sm:$0xff]  ;;  %v24_v12 = vld [vmem:[%s2883_s0 + $0x38] sm:$0xff] }
  0x1a   :  { %203 = vperm.xlu1 %1948, %v112_v19   ;;  %200 = vperm.xlu0 %1947, %v111_v20   ;;  %v23_v11 = vld [vmem:[%s2883_s0 + $0x30] sm:$0xff]  ;;  %v136_v13 = vld [vmem:[%s2880_s3 + $0x128] sm:$0xff]  ;;  %v135_v14 = vld [vmem:[%s2880_s3 + $0x120] sm:$0xff] }
  0x1b   :  { %1704 = vmatpush3.msra.mxu0 %v555_v34  ;;  %1833 = vmatprep.subr.mxu1 %v88_v37  ;;  %v25_v15 = vld [vmem:[%s2883_s0 + $0x40] sm:$0xff]  ;;  %v26_v16 = vld [vmem:[%s2883_s0 + $0x48] sm:$0xff]  ;;  %v138_v17 = vld [vmem:[%s2880_s3 + $0x138] sm:$0xff] }
  0x1c   :  { %1705 = vmatprep.subr.mxu0 %v554_v38  ;;  %1834 = vmatpush3.msra.mxu1 %v88_v37  ;;  %v137_v18 = vld [vmem:[%s2880_s3 + $0x130] sm:$0xff]  ;;  %v28_v20 = vld [vmem:[%s2883_s0 + $0x58] sm:$0xff]  ;;  %v140_v21 = vld [vmem:[%s2880_s3 + $0x148] sm:$0xff] }
  0x1d   :  { %1706 = vmatpush3.msra.mxu0 %v554_v38  ;;  %1835 = vmatprep.subr.mxu1 %v87_v41  ;;  %v27_v19 = vld [vmem:[%s2883_s0 + $0x50] sm:$0xff]  ;;  %v139_v22 = vld [vmem:[%s2880_s3 + $0x140] sm:$0xff]  ;;  %v30_v24 = vld [vmem:[%s2883_s0 + $0x68] sm:$0xff] }
  0x1e   :  { %209 = vperm.xlu1 %1948, %v114_v25   ;;  %206 = vperm.xlu0 %1947, %v113_v26   ;;  %v29_v23 = vld [vmem:[%s2883_s0 + $0x60] sm:$0xff]  ;;  %v142_v25 = vld [vmem:[%s2880_s3 + $0x158] sm:$0xff]  ;;  %v141_v26 = vld [vmem:[%s2880_s3 + $0x150] sm:$0xff] }
  0x1f   :  { %1707 = vmatprep.subr.mxu0 %v553_v42  ;;  %1836 = vmatpush3.msra.mxu1 %v87_v41  ;;  %v31_v27 = vld [vmem:[%s2883_s0 + $0x70] sm:$0xff]  ;;  %v32_v28 = vld [vmem:[%s2883_s0 + $0x78] sm:$0xff]  ;;  %v33_v31 = vld [vmem:[%s2883_s0 + $0x80] sm:$0xff] }
  0x20   :  { %1708 = vmatpush3.msra.mxu0 %v553_v42  ;;  %1837 = vmatprep.subr.mxu1 %v86_v43  ;;  %v34_v32 = vld [vmem:[%s2883_s0 + $0x88] sm:$0xff]  ;;  %v146_v33 = vld [vmem:[%s2880_s3 + $0x178] sm:$0xff]  ;;  %v145_v34 = vld [vmem:[%s2880_s3 + $0x170] sm:$0xff] }
  0x21   :  { %1709 = vmatprep.subr.mxu0 %v552_v44  ;;  %1838 = vmatpush3.msra.mxu1 %v86_v43  ;;  %v148_v37 = vld [vmem:[%s2880_s3 + $0x188] sm:$0xff]  ;;  %v147_v38 = vld [vmem:[%s2880_s3 + $0x180] sm:$0xff]  ;;  %v150_v41 = vld [vmem:[%s2880_s3 + $0x198] sm:$0xff] }
  0x22   :  { %215 = vperm.xlu1 %1948, %v116_v29   ;;  %212 = vperm.xlu0 %1947, %v115_v30   ;;  %v144_v29 = vld [vmem:[%s2880_s3 + $0x168] sm:$0xff]  ;;  %v143_v30 = vld [vmem:[%s2880_s3 + $0x160] sm:$0xff]  ;;  %v149_v42 = vld [vmem:[%s2880_s3 + $0x190] sm:$0xff] }
  0x23   :  { %1710 = vmatpush3.msra.mxu0 %v552_v44  ;;  %1839 = vmatprep.subr.mxu1 %v85_v47  ;;  %v39_v43 = vld [vmem:[%s2883_s0 + $0xb0] sm:$0xff]  ;;  %v40_v44 = vld [vmem:[%s2883_s0 + $0xb8] sm:$0xff] }
  0x24   :  { %1711 = vmatprep.subr.mxu0 %v551_v48  ;;  %1840 = vmatpush3.msra.mxu1 %v85_v47  ;;  %v41_v47 = vld [vmem:[%s2883_s0 + $0xc0] sm:$0xff] }
  0x25   :  { %1712 = vmatpush3.msra.mxu0 %v551_v48  ;;  %1841 = vmatprep.subr.mxu1 %v84_v51  ;;  %v42_v48 = vld [vmem:[%s2883_s0 + $0xc8] sm:$0xff] }
  0x26   :  { %221 = vperm.xlu1 %1948, %v118_v35   ;;  %218 = vperm.xlu0 %1947, %v117_v36   ;;  %v35_v35 = vld [vmem:[%s2883_s0 + $0x90] sm:$0xff]  ;;  %v36_v36 = vld [vmem:[%s2883_s0 + $0x98] sm:$0xff] }
  0x27   :  { %1713 = vmatprep.subr.mxu0 %v550_v52  ;;  %1842 = vmatpush3.msra.mxu1 %v84_v51  ;;  %v43_v51 = vld [vmem:[%s2883_s0 + $0xd0] sm:$0xff] }
  0x28   :  { %1714 = vmatpush3.msra.mxu0 %v550_v52  ;;  %1843 = vmatprep.subr.mxu1 %v83_v53  ;;  %v44_v52 = vld [vmem:[%s2883_s0 + $0xd8] sm:$0xff] }
  0x29   :  { %1715 = vmatprep.subr.mxu0 %v549_v54  ;;  %1844 = vmatpush3.msra.mxu1 %v83_v53  ;;  %v156_v53 = vld [vmem:[%s2880_s3 + $0x1c8] sm:$0xff] }
  0x2a   :  { %227 = vperm.xlu1 %1948, %v120_v39   ;;  %224 = vperm.xlu0 %1947, %v119_v40   ;;  %v37_v39 = vld [vmem:[%s2883_s0 + $0xa0] sm:$0xff]  ;;  %v38_v40 = vld [vmem:[%s2883_s0 + $0xa8] sm:$0xff] }
  0x2b   :  { %1716 = vmatpush3.msra.mxu0 %v549_v54  ;;  %1845 = vmatprep.subr.mxu1 %v82_v57  ;;  %v155_v54 = vld [vmem:[%s2880_s3 + $0x1c0] sm:$0xff] }
  0x2c   :  { %1717 = vmatprep.subr.mxu0 %v548_v58  ;;  %1846 = vmatpush3.msra.mxu1 %v82_v57  ;;  %v158_v57 = vld [vmem:[%s2880_s3 + $0x1d8] sm:$0xff] }
  0x2d   :  { %1718 = vmatpush3.msra.mxu0 %v548_v58  ;;  %1847 = vmatprep.subr.mxu1 %v81_v61  ;;  %v157_v58 = vld [vmem:[%s2880_s3 + $0x1d0] sm:$0xff] }
  0x2e   :  { %233 = vperm.xlu1 %1948, %v122_v45   ;;  %230 = vperm.xlu0 %1947, %v121_v46   ;;  %v152_v45 = vld [vmem:[%s2880_s3 + $0x1a8] sm:$0xff]  ;;  %v151_v46 = vld [vmem:[%s2880_s3 + $0x1a0] sm:$0xff] }
  0x2f   :  { %1849 = vmatprep.mubr.f32.mxu1 %v17_v62  ;;  %1848 = vmatpush3.msra.mxu1 %v81_v61  ;;  %v48_v61 = vld [vmem:[%s2883_s0 + $0xf8] sm:$0xff]  ;;  %v160_v62 = vld [vmem:[%s2880_s3 + $0x1e8] sm:$0xff] }
  0x30   :  { %1719 = vmatprep.subr.mxu0 %v547_v63  ;;  %1850 = vmatmul.mubr.f32.vlgmr.msra.gmra.mxu1 %v18_v0  ;;  %v49_v0 = vld [vmem:[%s2883_s0 + $0x100] sm:$0xff] }
  0x31   :  { %1720 = vmatpush3.msra.mxu0 %v547_v63  ;;  %1852 = vmatprep.mubr.f32.mxu1 %v19_v3  ;;  %v159_v63 = vld [vmem:[%s2880_s3 + $0x1e0] sm:$0xff]  ;;  %v162_v3 = vld [vmem:[%s2880_s3 + $0x1f8] sm:$0xff] }
  0x32   :  { %239 = vperm.xlu1 %1948, %v124_v49   ;;  %236 = vperm.xlu0 %1947, %v123_v50   ;;  %v154_v49 = vld [vmem:[%s2880_s3 + $0x1b8] sm:$0xff]  ;;  %v153_v50 = vld [vmem:[%s2880_s3 + $0x1b0] sm:$0xff] }
  0x34   :  { %1853 = vmatmul.mubr.f32.gmra.mxu1 %v20_v4  ;;  %v161_v4 = vld [vmem:[%s2880_s3 + $0x1f0] sm:$0xff] }
  0x35   :  { %1855 = vmatprep.mubr.f32.mxu1 %v21_v7 }
  0x36   :  { %245 = vperm.xlu1 %1948, %v126_v55   ;;  %242 = vperm.xlu0 %1947, %v125_v56   ;;  %v45_v55 = vld [vmem:[%s2883_s0 + $0xe0] sm:$0xff]  ;;  %v46_v56 = vld [vmem:[%s2883_s0 + $0xe8] sm:$0xff] }
  0x38   :  { %1856 = vmatmul.mubr.f32.gmra.mxu1 %v22_v8  ;;  %v52_v8 = vld [vmem:[%s2883_s0 + $0x118] sm:$0xff] }
  0x39   :  { %1858 = vmatprep.mubr.f32.mxu1 %v23_v11 }
  0x3a   :  { %251 = vperm.xlu1 %1948, %v128_v59   ;;  %248 = vperm.xlu0 %1947, %v127_v60   ;;  %v47_v59 = vld [vmem:[%s2883_s0 + $0xf0] sm:$0xff]  ;;  %v97_v60 = vlaneseq }
  0x3c   :  { %1859 = vmatmul.mubr.f32.gmra.mxu1 %v24_v12 }
  0x3d   :  { %1861 = vmatprep.mubr.f32.mxu1 %v25_v15 }
  0x3e   :  { %257 = vperm.xlu1 %1948, %v130_v1   ;;  %254 = vperm.xlu0 %1947, %v129_v2   ;;  %v2357_v1 = vand.u32 127, %v97_v60  ;;  %v50_v2 = vld [vmem:[%s2883_s0 + $0x108] sm:$0xff] }
  0x40   :  { %1862 = vmatmul.mubr.f32.gmra.mxu1 %v26_v16 }
  0x41   :  { %1864 = vmatprep.mubr.f32.mxu1 %v27_v19 }
  0x42   :  { %263 = vperm.xlu1 %1948, %v132_v5   ;;  %260 = vperm.xlu0 %1947, %v131_v6   ;;  %v51_v5 = vld [vmem:[%s2883_s0 + $0x110] sm:$0xff] }
  0x44   :  { %1865 = vmatmul.mubr.f32.gmra.mxu1 %v28_v20 }
  0x45   :  { %1867 = vmatprep.mubr.f32.mxu1 %v29_v23 }
  0x46   :  { %269 = vperm.xlu1 %1948, %v134_v9   ;;  %266 = vperm.xlu0 %1947, %v133_v10   ;;  %v1950_v9 = vmov 1.0   ;;  %v53_v10 = vld [vmem:[%s2883_s0 + $0x120] sm:$0xff] }
  0x48   :  { %1868 = vmatmul.mubr.f32.gmra.mxu1 %v30_v24 }
  0x49   :  { %1870 = vmatprep.mubr.f32.mxu1 %v31_v27 }
  0x4a   :  { %275 = vperm.xlu1 %1948, %v136_v13   ;;  %272 = vperm.xlu0 %1947, %v135_v14   ;;  %v54_v13 = vld [vmem:[%s2883_s0 + $0x128] sm:$0xff]  ;;  %v55_v14 = vld [vmem:[%s2883_s0 + $0x130] sm:$0xff] }
  0x4c   :  { %1871 = vmatmul.mubr.f32.gmra.mxu1 %v32_v28 }
  0x4d   :  { %1873 = vmatprep.mubr.f32.mxu1 %v33_v31 }
  0x4e   :  { %281 = vperm.xlu1 %1948, %v138_v17   ;;  %278 = vperm.xlu0 %1947, %v137_v18   ;;  %v56_v17 = vld [vmem:[%s2883_s0 + $0x138] sm:$0xff]  ;;  %v57_v18 = vld [vmem:[%s2883_s0 + $0x140] sm:$0xff] }
  0x50   :  { %1874 = vmatmul.mubr.f32.gmra.mxu1 %v34_v32 }
  0x51   :  { %1876 = vmatprep.mubr.f32.mxu1 %v35_v35 }
  0x52   :  { %287 = vperm.xlu1 %1948, %v140_v21   ;;  %284 = vperm.xlu0 %1947, %v139_v22   ;;  %v58_v21 = vld [vmem:[%s2883_s0 + $0x148] sm:$0xff]  ;;  %v59_v22 = vld [vmem:[%s2883_s0 + $0x150] sm:$0xff] }
  0x54   :  { %1877 = vmatmul.mubr.f32.gmra.mxu1 %v36_v36 }
  0x55   :  { %1879 = vmatprep.mubr.f32.mxu1 %v37_v39 }
  0x56   :  { %293 = vperm.xlu1 %1948, %v142_v25   ;;  %290 = vperm.xlu0 %1947, %v141_v26   ;;  %v60_v25 = vld [vmem:[%s2883_s0 + $0x158] sm:$0xff]  ;;  %v61_v26 = vld [vmem:[%s2883_s0 + $0x160] sm:$0xff] }
  0x58   :  { %1880 = vmatmul.mubr.f32.gmra.mxu1 %v38_v40 }
  0x59   :  { %1882 = vmatprep.mubr.f32.mxu1 %v39_v43 }
  0x5a   :  { %299 = vperm.xlu1 %1948, %v144_v29   ;;  %296 = vperm.xlu0 %1947, %v143_v30   ;;  %v62_v29 = vld [vmem:[%s2883_s0 + $0x168] sm:$0xff]  ;;  %v63_v30 = vld [vmem:[%s2883_s0 + $0x170] sm:$0xff] }
  0x5c   :  { %1883 = vmatmul.mubr.f32.gmra.mxu1 %v40_v44 }
  0x5d   :  { %1885 = vmatprep.mubr.f32.mxu1 %v41_v47 }
  0x5e   :  { %305 = vperm.xlu1 %1948, %v146_v33   ;;  %302 = vperm.xlu0 %1947, %v145_v34   ;;  %v64_v33 = vld [vmem:[%s2883_s0 + $0x178] sm:$0xff]  ;;  %v65_v34 = vld [vmem:[%s2883_s0 + $0x180] sm:$0xff] }
  0x60   :  { %1886 = vmatmul.mubr.f32.gmra.mxu1 %v42_v48 }
  0x61   :  { %1888 = vmatprep.mubr.f32.mxu1 %v43_v51 }
  0x62   :  { %311 = vperm.xlu1 %1948, %v148_v37   ;;  %308 = vperm.xlu0 %1947, %v147_v38   ;;  %v66_v37 = vld [vmem:[%s2883_s0 + $0x188] sm:$0xff]  ;;  %v67_v38 = vld [vmem:[%s2883_s0 + $0x190] sm:$0xff] }
  0x64   :  { %1889 = vmatmul.mubr.f32.gmra.mxu1 %v44_v52 }
  0x65   :  { %1891 = vmatprep.mubr.f32.mxu1 %v45_v55 }
  0x66   :  { %317 = vperm.xlu1 %1948, %v150_v41   ;;  %314 = vperm.xlu0 %1947, %v149_v42   ;;  %v68_v41 = vld [vmem:[%s2883_s0 + $0x198] sm:$0xff]  ;;  %v69_v42 = vld [vmem:[%s2883_s0 + $0x1a0] sm:$0xff] }
  0x68   :  { %1892 = vmatmul.mubr.f32.gmra.mxu1 %v46_v56 }
  0x69   :  { %1894 = vmatprep.mubr.f32.mxu1 %v47_v59 }
  0x6a   :  { %323 = vperm.xlu1 %1948, %v152_v45   ;;  %320 = vperm.xlu0 %1947, %v151_v46   ;;  %v70_v45 = vld [vmem:[%s2883_s0 + $0x1a8] sm:$0xff]  ;;  %v71_v46 = vld [vmem:[%s2883_s0 + $0x1b0] sm:$0xff] }
  0x6c   :  { %1895 = vmatmul.mubr.f32.gmra.mxu1 %v48_v61  ;;  %v78_v61 = vld [vmem:[%s2883_s0 + $0x1e8] sm:$0xff] }
  0x6d   :  { %1897 = vmatprep.mubr.f32.mxu1 %v49_v0 }
  0x6e   :  { %329 = vperm.xlu1 %1948, %v154_v49   ;;  %326 = vperm.xlu0 %1947, %v153_v50   ;;  %v72_v49 = vld [vmem:[%s2883_s0 + $0x1b8] sm:$0xff]  ;;  %v73_v50 = vld [vmem:[%s2883_s0 + $0x1c0] sm:$0xff] }
  0x70   :  { %1898 = vmatmul.mubr.f32.gmra.mxu1 %v50_v2  ;;  %v80_v2 = vld [vmem:[%s2883_s0 + $0x1f8] sm:$0xff] }
  0x71   :  { %1900 = vmatprep.mubr.f32.mxu1 %v51_v5 }
  0x72   :  { %335 = vperm.xlu1 %1948, %v156_v53   ;;  %332 = vperm.xlu0 %1947, %v155_v54   ;;  %v74_v53 = vld [vmem:[%s2883_s0 + $0x1c8] sm:$0xff]  ;;  %v75_v54 = vld [vmem:[%s2883_s0 + $0x1d0] sm:$0xff] }
  0x74   :  { %1901 = vmatmul.mubr.f32.gmra.mxu1 %v52_v8 }
  0x75   :  { %1903 = vmatprep.mubr.f32.mxu1 %v53_v10 }
  0x76   :  { %341 = vperm.xlu1 %1948, %v158_v57   ;;  %338 = vperm.xlu0 %1947, %v157_v58   ;;  %v76_v57 = vld [vmem:[%s2883_s0 + $0x1d8] sm:$0xff]  ;;  %v77_v58 = vld [vmem:[%s2883_s0 + $0x1e0] sm:$0xff] }
  0x78   :  { %1904 = vmatmul.mubr.f32.gmra.mxu1 %v54_v13 }
  0x79   :  { %1906 = vmatprep.mubr.f32.mxu1 %v55_v14 }
  0x7a   :  { %347 = vperm.xlu1 %1948, %v160_v62   ;;  %344 = vperm.xlu0 %1947, %v159_v63   ;;  %v79_v62 = vld [vmem:[%s2883_s0 + $0x1f0] sm:$0xff] }
  0x7c   :  { %1907 = vmatmul.mubr.f32.gmra.mxu1 %v56_v17 }
  0x7d   :  { %v171_v6 = vpop.permute.xlu1 %170  ;;  %v165_v7 = vpop.permute.xlu0 %164  ;;  %1909 = vmatprep.mubr.f32.mxu1 %v57_v18 }
  0x7e   :  { %353 = vperm.xlu1 %1948, %v162_v3   ;;  %350 = vperm.xlu0 %1947, %v161_v4   ;;  %vm355_vm0 = vcmp.eq.s32.totalorder %v165_v7, %v2357_v1  ;;  %vm357_vm1 = vcmp.eq.s32.totalorder %v171_v6, %v2357_v1 }
  0x7f   :  { %1721 = vmatprep.mubr.msk.f32.mxu0 %vm355_vm0, %v1950_v9 }
  0x80   :  { %1910 = vmatmul.mubr.f32.gmra.mxu1 %v58_v21 }
  0x81   :  { %v174_v11 = vpop.permute.xlu1 %173  ;;  %v168_v12 = vpop.permute.xlu0 %167  ;;  %1912 = vmatprep.mubr.f32.mxu1 %v59_v22 }
  0x82   :  { %vm356_vm2 = vcmp.eq.s32.totalorder %v168_v12, %v2357_v1  ;;  %vm358_vm3 = vcmp.eq.s32.totalorder %v174_v11, %v2357_v1 }
  0x83   :  { %1722 = vmatmul.mubr.msk.f32.vlgmr.msra.gmra.mxu0 %vm356_vm2, %v1950_v9 }
  0x84   :  { %1724 = vmatprep.mubr.msk.f32.mxu0 %vm357_vm1, %v1950_v9  ;;  %1913 = vmatmul.mubr.f32.gmra.mxu1 %v60_v25 }
  0x85   :  { %v180_v15 = vpop.permute.xlu1 %179  ;;  %v177_v16 = vpop.permute.xlu0 %176  ;;  %1915 = vmatprep.mubr.f32.mxu1 %v61_v26 }
  0x86   :  { %vm359_vm4 = vcmp.eq.s32.totalorder %v177_v16, %v2357_v1  ;;  %vm360_vm5 = vcmp.eq.s32.totalorder %v180_v15, %v2357_v1 }
  0x87   :  { %1725 = vmatmul.mubr.msk.f32.gmra.mxu0 %vm358_vm3, %v1950_v9 }
  0x88   :  { %1727 = vmatprep.mubr.msk.f32.mxu0 %vm359_vm4, %v1950_v9  ;;  %1916 = vmatmul.mubr.f32.gmra.mxu1 %v62_v29 }
  0x89   :  { %v186_v19 = vpop.permute.xlu1 %185  ;;  %v183_v20 = vpop.permute.xlu0 %182  ;;  %1918 = vmatprep.mubr.f32.mxu1 %v63_v30 }
  0x8a   :  { %vm361_vm6 = vcmp.eq.s32.totalorder %v183_v20, %v2357_v1  ;;  %vm362_vm7 = vcmp.eq.s32.totalorder %v186_v19, %v2357_v1 }
  0x8b   :  { %1728 = vmatmul.mubr.msk.f32.gmra.mxu0 %vm360_vm5, %v1950_v9 }
  0x8c   :  { %1730 = vmatprep.mubr.msk.f32.mxu0 %vm361_vm6, %v1950_v9  ;;  %1919 = vmatmul.mubr.f32.gmra.mxu1 %v64_v33 }
  0x8d   :  { %v192_v23 = vpop.permute.xlu1 %191  ;;  %v189_v24 = vpop.permute.xlu0 %188  ;;  %1921 = vmatprep.mubr.f32.mxu1 %v65_v34 }
  0x8e   :  { %vm363_vm8 = vcmp.eq.s32.totalorder %v189_v24, %v2357_v1  ;;  %vm364_vm9 = vcmp.eq.s32.totalorder %v192_v23, %v2357_v1 }
  0x8f   :  { %1731 = vmatmul.mubr.msk.f32.gmra.mxu0 %vm362_vm7, %v1950_v9 }
  0x90   :  { %1733 = vmatprep.mubr.msk.f32.mxu0 %vm363_vm8, %v1950_v9  ;;  %1922 = vmatmul.mubr.f32.gmra.mxu1 %v66_v37 }
  0x91   :  { %v198_v27 = vpop.permute.xlu1 %197  ;;  %v195_v28 = vpop.permute.xlu0 %194  ;;  %1924 = vmatprep.mubr.f32.mxu1 %v67_v38 }
  0x92   :  { %vm365_vm10 = vcmp.eq.s32.totalorder %v195_v28, %v2357_v1  ;;  %vm366_vm11 = vcmp.eq.s32.totalorder %v198_v27, %v2357_v1 }
  0x93   :  { %1734 = vmatmul.mubr.msk.f32.gmra.mxu0 %vm364_vm9, %v1950_v9 }
  0x94   :  { %1736 = vmatprep.mubr.msk.f32.mxu0 %vm365_vm10, %v1950_v9  ;;  %1925 = vmatmul.mubr.f32.gmra.mxu1 %v68_v41 }
  0x95   :  { %v204_v31 = vpop.permute.xlu1 %203  ;;  %v201_v32 = vpop.permute.xlu0 %200  ;;  %1927 = vmatprep.mubr.f32.mxu1 %v69_v42 }
  0x96   :  { %vm367_vm12 = vcmp.eq.s32.totalorder %v201_v32, %v2357_v1  ;;  %vm368_vm13 = vcmp.eq.s32.totalorder %v204_v31, %v2357_v1 }
  0x97   :  { %1737 = vmatmul.mubr.msk.f32.gmra.mxu0 %vm366_vm11, %v1950_v9 }
  0x98   :  { %1739 = vmatprep.mubr.msk.f32.mxu0 %vm367_vm12, %v1950_v9  ;;  %1928 = vmatmul.mubr.f32.gmra.mxu1 %v70_v45 }
  0x99   :  { %v210_v35 = vpop.permute.xlu1 %209  ;;  %v207_v36 = vpop.permute.xlu0 %206  ;;  %1930 = vmatprep.mubr.f32.mxu1 %v71_v46 }
  0x9a   :  { %vm369_vm14 = vcmp.eq.s32.totalorder %v207_v36, %v2357_v1  ;;  %vm370_vm15 = vcmp.eq.s32.totalorder %v210_v35, %v2357_v1 }
  0x9b   :  { %1740 = vmatmul.mubr.msk.f32.gmra.mxu0 %vm368_vm13, %v1950_v9 }
  0x9c   :  { %1742 = vmatprep.mubr.msk.f32.mxu0 %vm369_vm14, %v1950_v9  ;;  %1931 = vmatmul.mubr.f32.gmra.mxu1 %v72_v49 }
  0x9d   :  { %v216_v39 = vpop.permute.xlu1 %215  ;;  %v213_v40 = vpop.permute.xlu0 %212  ;;  %1933 = vmatprep.mubr.f32.mxu1 %v73_v50 }
  0x9e   :  { %vm371_vm0 = vcmp.eq.s32.totalorder %v213_v40, %v2357_v1  ;;  %vm372_vm1 = vcmp.eq.s32.totalorder %v216_v39, %v2357_v1 }
  0x9f   :  { %1743 = vmatmul.mubr.msk.f32.gmra.mxu0 %vm370_vm15, %v1950_v9 }
  0xa0   :  { %1745 = vmatprep.mubr.msk.f32.mxu0 %vm371_vm0, %v1950_v9  ;;  %1934 = vmatmul.mubr.f32.gmra.mxu1 %v74_v53 }
  0xa1   :  { %v222_v43 = vpop.permute.xlu1 %221  ;;  %v219_v44 = vpop.permute.xlu0 %218  ;;  %1936 = vmatprep.mubr.f32.mxu1 %v75_v54 }
  0xa2   :  { %vm373_vm2 = vcmp.eq.s32.totalorder %v219_v44, %v2357_v1  ;;  %vm374_vm3 = vcmp.eq.s32.totalorder %v222_v43, %v2357_v1 }
  0xa3   :  { %1746 = vmatmul.mubr.msk.f32.gmra.mxu0 %vm372_vm1, %v1950_v9 }
  0xa4   :  { %1748 = vmatprep.mubr.msk.f32.mxu0 %vm373_vm2, %v1950_v9  ;;  %1937 = vmatmul.mubr.f32.gmra.mxu1 %v76_v57 }
  0xa5   :  { %v228_v47 = vpop.permute.xlu1 %227  ;;  %v225_v48 = vpop.permute.xlu0 %224  ;;  %1939 = vmatprep.mubr.f32.mxu1 %v77_v58 }
  0xa6   :  { %vm375_vm4 = vcmp.eq.s32.totalorder %v225_v48, %v2357_v1  ;;  %vm376_vm5 = vcmp.eq.s32.totalorder %v228_v47, %v2357_v1 }
  0xa7   :  { %1749 = vmatmul.mubr.msk.f32.gmra.mxu0 %vm374_vm3, %v1950_v9 }
  0xa8   :  { %1751 = vmatprep.mubr.msk.f32.mxu0 %vm375_vm4, %v1950_v9  ;;  %1940 = vmatmul.mubr.f32.gmra.mxu1 %v78_v61 }
  0xa9   :  { %v234_v51 = vpop.permute.xlu1 %233  ;;  %v231_v52 = vpop.permute.xlu0 %230  ;;  %1942 = vmatprep.mubr.f32.mxu1 %v79_v62 }
  0xaa   :  { %vm377_vm6 = vcmp.eq.s32.totalorder %v231_v52, %v2357_v1  ;;  %vm378_vm7 = vcmp.eq.s32.totalorder %v234_v51, %v2357_v1 }
  0xab   :  { %1752 = vmatmul.mubr.msk.f32.gmra.mxu0 %vm376_vm5, %v1950_v9 }
  0xac   :  { %1754 = vmatprep.mubr.msk.f32.mxu0 %vm377_vm6, %v1950_v9  ;;  %1943 = vmatmul.mubr.f32.gmra.mxu1 %v80_v2 }
  0xad   :  { %v240_v55 = vpop.permute.xlu1 %239  ;;  %v237_v56 = vpop.permute.xlu0 %236 }
  0xae   :  { %vm379_vm8 = vcmp.eq.s32.totalorder %v237_v56, %v2357_v1  ;;  %vm380_vm9 = vcmp.eq.s32.totalorder %v240_v55, %v2357_v1 }
  0xaf   :  { %1755 = vmatmul.mubr.msk.f32.gmra.mxu0 %vm378_vm7, %v1950_v9 }
  0xb0   :  { %1757 = vmatprep.mubr.msk.f32.mxu0 %vm379_vm8, %v1950_v9 }
  0xb1   :  { %v246_v59 = vpop.permute.xlu1 %245  ;;  %v243_v60 = vpop.permute.xlu0 %242 }
  0xb2   :  { %vm381_vm10 = vcmp.eq.s32.totalorder %v243_v60, %v2357_v1  ;;  %vm382_vm11 = vcmp.eq.s32.totalorder %v246_v59, %v2357_v1 }
  0xb3   :  { %1758 = vmatmul.mubr.msk.f32.gmra.mxu0 %vm380_vm9, %v1950_v9 }
  0xb4   :  { %1760 = vmatprep.mubr.msk.f32.mxu0 %vm381_vm10, %v1950_v9 }
  0xb5   :  { %v252_v63 = vpop.permute.xlu1 %251  ;;  %v249_v0 = vpop.permute.xlu0 %248 }
  0xb6   :  { %vm383_vm12 = vcmp.eq.s32.totalorder %v249_v0, %v2357_v1  ;;  %vm384_vm13 = vcmp.eq.s32.totalorder %v252_v63, %v2357_v1 }
  0xb7   :  { %1761 = vmatmul.mubr.msk.f32.gmra.mxu0 %vm382_vm11, %v1950_v9 }
  0xb8   :  { %1763 = vmatprep.mubr.msk.f32.mxu0 %vm383_vm12, %v1950_v9 }
  0xb9   :  { %v258_v3 = vpop.permute.xlu1 %257  ;;  %v255_v4 = vpop.permute.xlu0 %254 }
  0xba   :  { %vm385_vm14 = vcmp.eq.s32.totalorder %v255_v4, %v2357_v1  ;;  %vm386_vm15 = vcmp.eq.s32.totalorder %v258_v3, %v2357_v1 }
  0xbb   :  { %1764 = vmatmul.mubr.msk.f32.gmra.mxu0 %vm384_vm13, %v1950_v9 }
  0xbc   :  { %1766 = vmatprep.mubr.msk.f32.mxu0 %vm385_vm14, %v1950_v9 }
  0xbd   :  { %v264_v5 = vpop.permute.xlu1 %263  ;;  %v261_v6 = vpop.permute.xlu0 %260 }
  0xbe   :  { %vm387_vm0 = vcmp.eq.s32.totalorder %v261_v6, %v2357_v1  ;;  %vm388_vm1 = vcmp.eq.s32.totalorder %v264_v5, %v2357_v1 }
  0xbf   :  { %1767 = vmatmul.mubr.msk.f32.gmra.mxu0 %vm386_vm15, %v1950_v9 }
  0xc0   :  { %1769 = vmatprep.mubr.msk.f32.mxu0 %vm387_vm0, %v1950_v9 }
  0xc1   :  { %v270_v7 = vpop.permute.xlu1 %269  ;;  %v267_v8 = vpop.permute.xlu0 %266 }
  0xc2   :  { %vm389_vm2 = vcmp.eq.s32.totalorder %v267_v8, %v2357_v1  ;;  %vm390_vm3 = vcmp.eq.s32.totalorder %v270_v7, %v2357_v1 }
  0xc3   :  { %1770 = vmatmul.mubr.msk.f32.gmra.mxu0 %vm388_vm1, %v1950_v9 }
  0xc4   :  { %1772 = vmatprep.mubr.msk.f32.mxu0 %vm389_vm2, %v1950_v9 }
  0xc5   :  { %v276_v10 = vpop.permute.xlu1 %275  ;;  %v273_v11 = vpop.permute.xlu0 %272 }
  0xc6   :  { %vm391_vm4 = vcmp.eq.s32.totalorder %v273_v11, %v2357_v1  ;;  %vm392_vm5 = vcmp.eq.s32.totalorder %v276_v10, %v2357_v1 }
  0xc7   :  { %1773 = vmatmul.mubr.msk.f32.gmra.mxu0 %vm390_vm3, %v1950_v9 }
  0xc8   :  { %1775 = vmatprep.mubr.msk.f32.mxu0 %vm391_vm4, %v1950_v9 }
  0xc9   :  { %v282_v12 = vpop.permute.xlu1 %281  ;;  %v279_v13 = vpop.permute.xlu0 %278 }
  0xca   :  { %vm393_vm6 = vcmp.eq.s32.totalorder %v279_v13, %v2357_v1  ;;  %vm394_vm7 = vcmp.eq.s32.totalorder %v282_v12, %v2357_v1 }
  0xcb   :  { %1776 = vmatmul.mubr.msk.f32.gmra.mxu0 %vm392_vm5, %v1950_v9 }
  0xcc   :  { %1778 = vmatprep.mubr.msk.f32.mxu0 %vm393_vm6, %v1950_v9 }
  0xcd   :  { %v288_v14 = vpop.permute.xlu1 %287  ;;  %v285_v15 = vpop.permute.xlu0 %284 }
  0xce   :  { %vm395_vm8 = vcmp.eq.s32.totalorder %v285_v15, %v2357_v1  ;;  %vm396_vm9 = vcmp.eq.s32.totalorder %v288_v14, %v2357_v1 }
  0xcf   :  { %1779 = vmatmul.mubr.msk.f32.gmra.mxu0 %vm394_vm7, %v1950_v9 }
  0xd0   :  { %1781 = vmatprep.mubr.msk.f32.mxu0 %vm395_vm8, %v1950_v9 }
  0xd1   :  { %v294_v16 = vpop.permute.xlu1 %293  ;;  %v291_v17 = vpop.permute.xlu0 %290 }
  0xd2   :  { %vm397_vm10 = vcmp.eq.s32.totalorder %v291_v17, %v2357_v1  ;;  %vm398_vm11 = vcmp.eq.s32.totalorder %v294_v16, %v2357_v1 }
  0xd3   :  { %1782 = vmatmul.mubr.msk.f32.gmra.mxu0 %vm396_vm9, %v1950_v9 }
  0xd4   :  { %1784 = vmatprep.mubr.msk.f32.mxu0 %vm397_vm10, %v1950_v9 }
  0xd5   :  { %v300_v18 = vpop.permute.xlu1 %299  ;;  %v297_v19 = vpop.permute.xlu0 %296 }
  0xd6   :  { %vm399_vm12 = vcmp.eq.s32.totalorder %v297_v19, %v2357_v1  ;;  %vm400_vm13 = vcmp.eq.s32.totalorder %v300_v18, %v2357_v1 }
  0xd7   :  { %1785 = vmatmul.mubr.msk.f32.gmra.mxu0 %vm398_vm11, %v1950_v9 }
  0xd8   :  { %1787 = vmatprep.mubr.msk.f32.mxu0 %vm399_vm12, %v1950_v9 }
  0xd9   :  { %v306_v20 = vpop.permute.xlu1 %305  ;;  %v303_v21 = vpop.permute.xlu0 %302 }
  0xda   :  { %vm401_vm14 = vcmp.eq.s32.totalorder %v303_v21, %v2357_v1  ;;  %vm402_vm15 = vcmp.eq.s32.totalorder %v306_v20, %v2357_v1 }
  0xdb   :  { %1788 = vmatmul.mubr.msk.f32.gmra.mxu0 %vm400_vm13, %v1950_v9 }
  0xdc   :  { %1790 = vmatprep.mubr.msk.f32.mxu0 %vm401_vm14, %v1950_v9 }
  0xdd   :  { %v312_v22 = vpop.permute.xlu1 %311  ;;  %v309_v23 = vpop.permute.xlu0 %308 }
  0xde   :  { %vm403_vm0 = vcmp.eq.s32.totalorder %v309_v23, %v2357_v1  ;;  %vm404_vm1 = vcmp.eq.s32.totalorder %v312_v22, %v2357_v1 }
  0xdf   :  { %1791 = vmatmul.mubr.msk.f32.gmra.mxu0 %vm402_vm15, %v1950_v9 }
  0xe0   :  { %1793 = vmatprep.mubr.msk.f32.mxu0 %vm403_vm0, %v1950_v9 }
  0xe1   :  { %v318_v24 = vpop.permute.xlu1 %317  ;;  %v315_v25 = vpop.permute.xlu0 %314 }
  0xe2   :  { %vm405_vm2 = vcmp.eq.s32.totalorder %v315_v25, %v2357_v1  ;;  %vm406_vm3 = vcmp.eq.s32.totalorder %v318_v24, %v2357_v1 }
  0xe3   :  { %1794 = vmatmul.mubr.msk.f32.gmra.mxu0 %vm404_vm1, %v1950_v9 }
  0xe4   :  { %1796 = vmatprep.mubr.msk.f32.mxu0 %vm405_vm2, %v1950_v9 }
  0xe5   :  { %v324_v26 = vpop.permute.xlu1 %323  ;;  %v321_v27 = vpop.permute.xlu0 %320 }
  0xe6   :  { %vm407_vm4 = vcmp.eq.s32.totalorder %v321_v27, %v2357_v1  ;;  %vm408_vm5 = vcmp.eq.s32.totalorder %v324_v26, %v2357_v1 }
  0xe7   :  { %1797 = vmatmul.mubr.msk.f32.gmra.mxu0 %vm406_vm3, %v1950_v9 }
  0xe8   :  { %1799 = vmatprep.mubr.msk.f32.mxu0 %vm407_vm4, %v1950_v9 }
  0xe9   :  { %v330_v28 = vpop.permute.xlu1 %329  ;;  %v327_v29 = vpop.permute.xlu0 %326 }
  0xea   :  { %vm409_vm6 = vcmp.eq.s32.totalorder %v327_v29, %v2357_v1  ;;  %vm410_vm7 = vcmp.eq.s32.totalorder %v330_v28, %v2357_v1 }
  0xeb   :  { %1800 = vmatmul.mubr.msk.f32.gmra.mxu0 %vm408_vm5, %v1950_v9 }
  0xec   :  { %1802 = vmatprep.mubr.msk.f32.mxu0 %vm409_vm6, %v1950_v9 }
  0xed   :  { %v336_v30 = vpop.permute.xlu1 %335  ;;  %v333_v31 = vpop.permute.xlu0 %332 }
  0xee   :  { %vm411_vm8 = vcmp.eq.s32.totalorder %v333_v31, %v2357_v1  ;;  %vm412_vm9 = vcmp.eq.s32.totalorder %v336_v30, %v2357_v1 }
  0xef   :  { %1803 = vmatmul.mubr.msk.f32.gmra.mxu0 %vm410_vm7, %v1950_v9 }
  0xf0   :  { %1805 = vmatprep.mubr.msk.f32.mxu0 %vm411_vm8, %v1950_v9  ;;  %v1851_v38 = vpop.f32.mrf.mxu1 }
  0xf1   :  { %v342_v32 = vpop.permute.xlu1 %341  ;;  %v339_v33 = vpop.permute.xlu0 %338 }
  0xf2   :  { %vm413_vm10 = vcmp.eq.s32.totalorder %v339_v33, %v2357_v1  ;;  %vm414_vm11 = vcmp.eq.s32.totalorder %v342_v32, %v2357_v1  ;;  %v1014_v39 = vpop.f32.mrf.mxu1 }
  0xf3   :  { %1806 = vmatmul.mubr.msk.f32.gmra.mxu0 %vm412_vm9, %v1950_v9 }
  0xf4   :  { %1808 = vmatprep.mubr.msk.f32.mxu0 %vm413_vm10, %v1950_v9  ;;  %v1854_v40 = vpop.f32.mrf.mxu1 }
  0xf5   :  { %v348_v34 = vpop.permute.xlu1 %347  ;;  %v345_v35 = vpop.permute.xlu0 %344 }
  0xf6   :  { %vm415_vm12 = vcmp.eq.s32.totalorder %v345_v35, %v2357_v1  ;;  %vm416_vm13 = vcmp.eq.s32.totalorder %v348_v34, %v2357_v1  ;;  %v1024_v41 = vpop.f32.mrf.mxu1 }
  0xf7   :  { %1809 = vmatmul.mubr.msk.f32.gmra.mxu0 %vm414_vm11, %v1950_v9 }
  0xf8   :  { %1811 = vmatprep.mubr.msk.f32.mxu0 %vm415_vm12, %v1950_v9  ;;  %v1857_v42 = vpop.f32.mrf.mxu1 }
  0xf9   :  { %v351_v36 = vpop.permute.xlu0 %350  ;;  %v354_v37 = vpop.permute.xlu1 %353 }
  0xfa   :  { %vm417_vm14 = vcmp.eq.s32.totalorder %v351_v36, %v2357_v1  ;;  %vm418_vm15 = vcmp.eq.s32.totalorder %v354_v37, %v2357_v1  ;;  %v1034_v43 = vpop.f32.mrf.mxu1 }
  0xfb   :  { %1812 = vmatmul.mubr.msk.f32.gmra.mxu0 %vm416_vm13, %v1950_v9 }
  0xfc   :  { %1814 = vmatprep.mubr.msk.f32.mxu0 %vm417_vm14, %v1950_v9  ;;  %v1860_v44 = vpop.f32.mrf.mxu1 }
  0xfe   :  { %v1044_v45 = vpop.f32.mrf.mxu1 }
  0xff   :  { %1815 = vmatmul.mubr.msk.f32.gmra.mxu0 %vm418_vm15, %v1950_v9 }
 0x100   :  { %v1863_v46 = vpop.f32.mrf.mxu1 }
 0x102   :  { %v1054_v47 = vpop.f32.mrf.mxu1 }
 0x104   :  { %v1866_v48 = vpop.f32.mrf.mxu1 }
 0x106   :  { %v1064_v49 = vpop.f32.mrf.mxu1 }
 0x108   :  { %v2586_v50 = vpop.f32.mrf.mxu1 }
 0x10a   :  { %v2588_v51 = vpop.f32.mrf.mxu1 }
 0x10c   :  { %v2590_v52 = vpop.f32.mrf.mxu1 }
 0x10e   :  { %v2592_v1 = vpop.f32.mrf.mxu1 }
 0x110   :  { %v2594_v9 = vpop.f32.mrf.mxu1 }
 0x112   :  { %v2596_v53 = vpop.f32.mrf.mxu1 }
 0x114   :  { %v2598_v54 = vpop.f32.mrf.mxu1 }
 0x116   :  { %v2600_v55 = vpop.f32.mrf.mxu1 }
 0x118   :  { %v2602_v56 = vpop.f32.mrf.mxu1 }
 0x11a   :  { %v2604_v57 = vpop.f32.mrf.mxu1 }
 0x11c   :  { %v2606_v58 = vpop.f32.mrf.mxu1 }
 0x11e   :  { %v2608_v59 = vpop.f32.mrf.mxu1 }
 0x120   :  { %v2610_v60 = vpop.f32.mrf.mxu1 }
 0x122   :  { %v2612_v61 = vpop.f32.mrf.mxu1 }
 0x124   :  { %v2614_v62 = vpop.f32.mrf.mxu1 }
 0x126   :  { %v2616_v63 = vpop.f32.mrf.mxu1 }
 0x128   :  { %v2618_v0 = vpop.f32.mrf.mxu1 }
 0x12a   :  { %v2620_v2 = vpop.f32.mrf.mxu1 }
 0x12c   :  { %v2622_v3 = vpop.f32.mrf.mxu1 }
 0x12e   :  { %v2624_v4 = vpop.f32.mrf.mxu1 }
 0x130   :  { %v2626_v8 = vpop.f32.mrf.mxu1 }
 0x132   :  { %v2634_v14 = vpop.f32.mrf.mxu1 }
 0x134   :  { %v2642_v19 = vpop.f32.mrf.mxu1 }
 0x136   :  { %v2650_v24 = vpop.f32.mrf.mxu1 }
 0x138   :  { %v2658_v29 = vpop.f32.mrf.mxu1 }
 0x13a   :  { %v2666_v34 = vpop.f32.mrf.mxu1 }
 0x143   :  { %v1723_v5 = vpop.f32.mrf.mxu0 }
 0x144   :  { %v1020_v6 = vadd.f32 %v1851_v38, %v1723_v5 }
 0x145   :  { %v629_v7 = vpop.f32.mrf.mxu0 }
 0x146   :  { %1334 = vst [vmem:[%s2884_s4 + $0x8] sm:$0xff] %v1020_v6  ;;  %v1015_v10 = vadd.f32 %v1014_v39, %v629_v7  ;;  %v2675_v39 = vpop.f32.mrf.mxu1 }
 0x147   :  { %v1726_v11 = vpop.f32.mrf.mxu0 }
 0x148   :  { %1333 = vst [vmem:[%s2884_s4] sm:$0xff] %v1015_v10  ;;  %v1030_v12 = vadd.f32 %v1854_v40, %v1726_v11 }
 0x149   :  { %v639_v13 = vpop.f32.mrf.mxu0 }
 0x14a   :  { %1336 = vst [vmem:[%s2884_s4 + $0x18] sm:$0xff] %v1030_v12  ;;  %v1025_v15 = vadd.f32 %v1024_v41, %v639_v13 }
 0x14b   :  { %v1729_v16 = vpop.f32.mrf.mxu0 }
 0x14c   :  { %1335 = vst [vmem:[%s2884_s4 + $0x10] sm:$0xff] %v1025_v15  ;;  %v1040_v17 = vadd.f32 %v1857_v42, %v1729_v16 }
 0x14d   :  { %v649_v18 = vpop.f32.mrf.mxu0 }
 0x14e   :  { %1338 = vst [vmem:[%s2884_s4 + $0x28] sm:$0xff] %v1040_v17  ;;  %v1035_v20 = vadd.f32 %v1034_v43, %v649_v18 }
 0x14f   :  { %v1732_v21 = vpop.f32.mrf.mxu0 }
 0x150   :  { %1337 = vst [vmem:[%s2884_s4 + $0x20] sm:$0xff] %v1035_v20  ;;  %v1050_v22 = vadd.f32 %v1860_v44, %v1732_v21  ;;  %v2685_v44 = vpop.f32.mrf.mxu1 }
 0x151   :  { %v659_v23 = vpop.f32.mrf.mxu0 }
 0x152   :  { %1340 = vst [vmem:[%s2884_s4 + $0x38] sm:$0xff] %v1050_v22  ;;  %v1045_v25 = vadd.f32 %v1044_v45, %v659_v23 }
 0x153   :  { %v1735_v26 = vpop.f32.mrf.mxu0 }
 0x154   :  { %1339 = vst [vmem:[%s2884_s4 + $0x30] sm:$0xff] %v1045_v25  ;;  %v1060_v27 = vadd.f32 %v1863_v46, %v1735_v26 }
 0x155   :  { %v669_v28 = vpop.f32.mrf.mxu0 }
 0x156   :  { %1342 = vst [vmem:[%s2884_s4 + $0x48] sm:$0xff] %v1060_v27  ;;  %v1055_v30 = vadd.f32 %v1054_v47, %v669_v28 }
 0x157   :  { %v1738_v31 = vpop.f32.mrf.mxu0 }
 0x158   :  { %1341 = vst [vmem:[%s2884_s4 + $0x40] sm:$0xff] %v1055_v30  ;;  %v1070_v32 = vadd.f32 %v1866_v48, %v1738_v31 }
 0x159   :  { %v679_v33 = vpop.f32.mrf.mxu0 }
 0x15a   :  { %1344 = vst [vmem:[%s2884_s4 + $0x58] sm:$0xff] %v1070_v32  ;;  %v1065_v35 = vadd.f32 %v1064_v49, %v679_v33  ;;  %v2695_v49 = vpop.f32.mrf.mxu1 }
 0x15b   :  { %v1741_v36 = vpop.f32.mrf.mxu0 }
 0x15c   :  { %1343 = vst [vmem:[%s2884_s4 + $0x50] sm:$0xff] %v1065_v35  ;;  %v1080_v37 = vadd.f32 %v2586_v50, %v1741_v36  ;;  %v2705_v5 = vpop.f32.mrf.mxu1 }
 0x15d   :  { %v689_v38 = vpop.f32.mrf.mxu0 }
 0x15e   :  { %1346 = vst [vmem:[%s2884_s4 + $0x68] sm:$0xff] %v1080_v37  ;;  %v1075_v40 = vadd.f32 %v2588_v51, %v689_v38  ;;  %v2715_v10 = vpop.f32.mrf.mxu1 }
 0x15f   :  { %v1744_v41 = vpop.f32.mrf.mxu0 }
 0x160   :  { %1345 = vst [vmem:[%s2884_s4 + $0x60] sm:$0xff] %v1075_v40  ;;  %v1090_v42 = vadd.f32 %v2590_v52, %v1744_v41  ;;  %v2725_v13 = vpop.f32.mrf.mxu1 }
 0x161   :  { %v699_v43 = vpop.f32.mrf.mxu0 }
 0x162   :  { %1348 = vst [vmem:[%s2884_s4 + $0x78] sm:$0xff] %v1090_v42  ;;  %v1085_v45 = vadd.f32 %v2592_v1, %v699_v43  ;;  %v2735_v17 = vpop.f32.mrf.mxu1 }
 0x163   :  { %v1747_v46 = vpop.f32.mrf.mxu0 }
 0x164   :  { %1347 = vst [vmem:[%s2884_s4 + $0x70] sm:$0xff] %v1085_v45  ;;  %v1100_v47 = vadd.f32 %v2594_v9, %v1747_v46  ;;  %v2745_v21 = vpop.f32.mrf.mxu1 }
 0x165   :  { %v709_v48 = vpop.f32.mrf.mxu0 }
 0x166   :  { %1350 = vst [vmem:[%s2884_s4 + $0x88] sm:$0xff] %v1100_v47  ;;  %v1095_v50 = vadd.f32 %v2596_v53, %v709_v48  ;;  %v1920_v25 = vpop.f32.mrf.mxu1 }
 0x167   :  { %v1750_v51 = vpop.f32.mrf.mxu0 }
 0x168   :  { %1349 = vst [vmem:[%s2884_s4 + $0x80] sm:$0xff] %v1095_v50  ;;  %v1110_v52 = vadd.f32 %v2598_v54, %v1750_v51  ;;  %v1244_v28 = vpop.f32.mrf.mxu1 }
 0x169   :  { %v719_v1 = vpop.f32.mrf.mxu0 }
 0x16a   :  { %1352 = vst [vmem:[%s2884_s4 + $0x98] sm:$0xff] %v1110_v52  ;;  %v1105_v9 = vadd.f32 %v2600_v55, %v719_v1  ;;  %v1923_v32 = vpop.f32.mrf.mxu1 }
 0x16b   :  { %v1753_v6 = vpop.f32.mrf.mxu0 }
 0x16c   :  { %1351 = vst [vmem:[%s2884_s4 + $0x90] sm:$0xff] %v1105_v9  ;;  %v1120_v53 = vadd.f32 %v2602_v56, %v1753_v6  ;;  %v1254_v36 = vpop.f32.mrf.mxu1 }
 0x16d   :  { %v729_v7 = vpop.f32.mrf.mxu0 }
 0x16e   :  { %1354 = vst [vmem:[%s2884_s4 + $0xa8] sm:$0xff] %v1120_v53  ;;  %v1115_v54 = vadd.f32 %v2604_v57, %v729_v7  ;;  %v1926_v40 = vpop.f32.mrf.mxu1 }
 0x16f   :  { %v1756_v11 = vpop.f32.mrf.mxu0 }
 0x170   :  { %1353 = vst [vmem:[%s2884_s4 + $0xa0] sm:$0xff] %v1115_v54  ;;  %v1130_v55 = vadd.f32 %v2606_v58, %v1756_v11  ;;  %v1264_v43 = vpop.f32.mrf.mxu1 }
 0x171   :  { %v739_v12 = vpop.f32.mrf.mxu0 }
 0x172   :  { %1356 = vst [vmem:[%s2884_s4 + $0xb8] sm:$0xff] %v1130_v55  ;;  %v1125_v56 = vadd.f32 %v2608_v59, %v739_v12  ;;  %v1929_v47 = vpop.f32.mrf.mxu1 }
 0x173   :  { %v1759_v15 = vpop.f32.mrf.mxu0 }
 0x174   :  { %1355 = vst [vmem:[%s2884_s4 + $0xb0] sm:$0xff] %v1125_v56  ;;  %v1140_v57 = vadd.f32 %v2610_v60, %v1759_v15  ;;  %v1274_v51 = vpop.f32.mrf.mxu1 }
 0x175   :  { %v749_v16 = vpop.f32.mrf.mxu0 }
 0x176   :  { %1358 = vst [vmem:[%s2884_s4 + $0xc8] sm:$0xff] %v1140_v57  ;;  %v1135_v58 = vadd.f32 %v2612_v61, %v749_v16  ;;  %v1932_v9 = vpop.f32.mrf.mxu1 }
 0x177   :  { %v1762_v18 = vpop.f32.mrf.mxu0 }
 0x178   :  { %1357 = vst [vmem:[%s2884_s4 + $0xc0] sm:$0xff] %v1135_v58  ;;  %v1150_v59 = vadd.f32 %v2614_v62, %v1762_v18  ;;  %v1284_v54 = vpop.f32.mrf.mxu1 }
 0x179   :  { %v759_v20 = vpop.f32.mrf.mxu0 }
 0x17a   :  { %1360 = vst [vmem:[%s2884_s4 + $0xd8] sm:$0xff] %v1150_v59  ;;  %v1145_v60 = vadd.f32 %v2616_v63, %v759_v20  ;;  %v1935_v56 = vpop.f32.mrf.mxu1 }
 0x17b   :  { %v1765_v22 = vpop.f32.mrf.mxu0 }
 0x17c   :  { %1359 = vst [vmem:[%s2884_s4 + $0xd0] sm:$0xff] %v1145_v60  ;;  %v1160_v61 = vadd.f32 %v2618_v0, %v1765_v22  ;;  %v1294_v58 = vpop.f32.mrf.mxu1 }
 0x17d   :  { %v769_v23 = vpop.f32.mrf.mxu0 }
 0x17e   :  { %1362 = vst [vmem:[%s2884_s4 + $0xe8] sm:$0xff] %v1160_v61  ;;  %v1155_v62 = vadd.f32 %v2620_v2, %v769_v23  ;;  %v1938_v60 = vpop.f32.mrf.mxu1 }
 0x17f   :  { %v1768_v26 = vpop.f32.mrf.mxu0 }
 0x180   :  { %1361 = vst [vmem:[%s2884_s4 + $0xe0] sm:$0xff] %v1155_v62  ;;  %v1170_v63 = vadd.f32 %v2622_v3, %v1768_v26  ;;  %v1304_v62 = vpop.f32.mrf.mxu1 }
 0x181   :  { %v779_v27 = vpop.f32.mrf.mxu0 }
 0x182   :  { %1364 = vst [vmem:[%s2884_s4 + $0xf8] sm:$0xff] %v1170_v63  ;;  %v1165_v0 = vadd.f32 %v2624_v4, %v779_v27 }
 0x183   :  { %v1771_v30 = vpop.f32.mrf.mxu0 }
 0x184   :  { %1363 = vst [vmem:[%s2884_s4 + $0xf0] sm:$0xff] %v1165_v0  ;;  %v1180_v2 = vadd.f32 %v2626_v8, %v1771_v30  ;;  %v1941_v0 = vpop.f32.mrf.mxu1 }
 0x185   :  { %v789_v31 = vpop.f32.mrf.mxu0 }
 0x186   :  { %1366 = vst [vmem:[%s2884_s4 + $0x108] sm:$0xff] %v1180_v2  ;;  %v1175_v3 = vadd.f32 %v2634_v14, %v789_v31 }
 0x187   :  { %v1774_v33 = vpop.f32.mrf.mxu0 }
 0x188   :  { %1365 = vst [vmem:[%s2884_s4 + $0x100] sm:$0xff] %v1175_v3  ;;  %v1190_v4 = vadd.f32 %v2642_v19, %v1774_v33  ;;  %v1314_v3 = vpop.f32.mrf.mxu1 }
 0x189   :  { %v799_v35 = vpop.f32.mrf.mxu0 }
 0x18a   :  { %1368 = vst [vmem:[%s2884_s4 + $0x118] sm:$0xff] %v1190_v4  ;;  %v1185_v8 = vadd.f32 %v2650_v24, %v799_v35 }
 0x18b   :  { %v1777_v37 = vpop.f32.mrf.mxu0 }
 0x18c   :  { %1367 = vst [vmem:[%s2884_s4 + $0x110] sm:$0xff] %v1185_v8  ;;  %v1200_v14 = vadd.f32 %v2658_v29, %v1777_v37  ;;  %v1944_v8 = vpop.f32.mrf.mxu1 }
 0x18d   :  { %v809_v38 = vpop.f32.mrf.mxu0 }
 0x18e   :  { %1370 = vst [vmem:[%s2884_s4 + $0x128] sm:$0xff] %v1200_v14  ;;  %v1195_v19 = vadd.f32 %v2666_v34, %v809_v38 }
 0x18f   :  { %v1780_v41 = vpop.f32.mrf.mxu0 }
 0x190   :  { %1369 = vst [vmem:[%s2884_s4 + $0x120] sm:$0xff] %v1195_v19  ;;  %v1210_v24 = vadd.f32 %v2675_v39, %v1780_v41 }
 0x191   :  { %v819_v42 = vpop.f32.mrf.mxu0 }
 0x192   :  { %1372 = vst [vmem:[%s2884_s4 + $0x138] sm:$0xff] %v1210_v24  ;;  %v1205_v29 = vadd.f32 %v2685_v44, %v819_v42 }
 0x193   :  { %v1783_v45 = vpop.f32.mrf.mxu0 }
 0x194   :  { %1371 = vst [vmem:[%s2884_s4 + $0x130] sm:$0xff] %v1205_v29  ;;  %v1220_v34 = vadd.f32 %v2695_v49, %v1783_v45 }
 0x195   :  { %v829_v46 = vpop.f32.mrf.mxu0 }
 0x196   :  { %1374 = vst [vmem:[%s2884_s4 + $0x148] sm:$0xff] %v1220_v34  ;;  %v1215_v39 = vadd.f32 %v2705_v5, %v829_v46 }
 0x197   :  { %v1786_v48 = vpop.f32.mrf.mxu0 }
 0x198   :  { %1373 = vst [vmem:[%s2884_s4 + $0x140] sm:$0xff] %v1215_v39  ;;  %v1230_v44 = vadd.f32 %v2715_v10, %v1786_v48 }
 0x199   :  { %v839_v50 = vpop.f32.mrf.mxu0 }
 0x19a   :  { %1376 = vst [vmem:[%s2884_s4 + $0x158] sm:$0xff] %v1230_v44  ;;  %v1225_v49 = vadd.f32 %v2725_v13, %v839_v50 }
 0x19b   :  { %v1789_v52 = vpop.f32.mrf.mxu0 }
 0x19c   :  { %1375 = vst [vmem:[%s2884_s4 + $0x150] sm:$0xff] %v1225_v49  ;;  %v1240_v1 = vadd.f32 %v2735_v17, %v1789_v52 }
 0x19d   :  { %v849_v5 = vpop.f32.mrf.mxu0 }
 0x19e   :  { %1378 = vst [vmem:[%s2884_s4 + $0x168] sm:$0xff] %v1240_v1  ;;  %v1235_v6 = vadd.f32 %v2745_v21, %v849_v5 }
 0x19f   :  { %v1792_v53 = vpop.f32.mrf.mxu0 }
 0x1a0   :  { %1377 = vst [vmem:[%s2884_s4 + $0x160] sm:$0xff] %v1235_v6  ;;  %v1250_v7 = vadd.f32 %v1920_v25, %v1792_v53 }
 0x1a1   :  { %v859_v10 = vpop.f32.mrf.mxu0 }
 0x1a2   :  { %1380 = vst [vmem:[%s2884_s4 + $0x178] sm:$0xff] %v1250_v7  ;;  %v1245_v11 = vadd.f32 %v1244_v28, %v859_v10 }
 0x1a3   :  { %v1795_v55 = vpop.f32.mrf.mxu0 }
 0x1a4   :  { %1379 = vst [vmem:[%s2884_s4 + $0x170] sm:$0xff] %v1245_v11  ;;  %v1260_v12 = vadd.f32 %v1923_v32, %v1795_v55 }
 0x1a5   :  { %v869_v13 = vpop.f32.mrf.mxu0 }
 0x1a6   :  { %1382 = vst [vmem:[%s2884_s4 + $0x188] sm:$0xff] %v1260_v12  ;;  %v1255_v15 = vadd.f32 %v1254_v36, %v869_v13 }
 0x1a7   :  { %v1798_v57 = vpop.f32.mrf.mxu0 }
 0x1a8   :  { %1381 = vst [vmem:[%s2884_s4 + $0x180] sm:$0xff] %v1255_v15  ;;  %v1270_v16 = vadd.f32 %v1926_v40, %v1798_v57  ;;  %v1324_v40 = vpop.f32.mrf.mxu1 }
 0x1a9   :  { %v879_v17 = vpop.f32.mrf.mxu0 }
 0x1aa   :  { %1384 = vst [vmem:[%s2884_s4 + $0x198] sm:$0xff] %v1270_v16  ;;  %v1265_v18 = vadd.f32 %v1264_v43, %v879_v17 }
 0x1ab   :  { %v1801_v59 = vpop.f32.mrf.mxu0 }
 0x1ac   :  { %1383 = vst [vmem:[%s2884_s4 + $0x190] sm:$0xff] %v1265_v18  ;;  %v1280_v20 = vadd.f32 %v1929_v47, %v1801_v59 }
 0x1ad   :  { %v889_v21 = vpop.f32.mrf.mxu0 }
 0x1ae   :  { %1386 = vst [vmem:[%s2884_s4 + $0x1a8] sm:$0xff] %v1280_v20  ;;  %v1275_v22 = vadd.f32 %v1274_v51, %v889_v21 }
 0x1af   :  { %v1804_v61 = vpop.f32.mrf.mxu0 }
 0x1b0   :  { %1385 = vst [vmem:[%s2884_s4 + $0x1a0] sm:$0xff] %v1275_v22  ;;  %v1290_v23 = vadd.f32 %v1932_v9, %v1804_v61 }
 0x1b1   :  { %v899_v25 = vpop.f32.mrf.mxu0 }
 0x1b2   :  { %1388 = vst [vmem:[%s2884_s4 + $0x1b8] sm:$0xff] %v1290_v23  ;;  %v1285_v26 = vadd.f32 %v1284_v54, %v899_v25 }
 0x1b3   :  { %v1807_v63 = vpop.f32.mrf.mxu0 }
 0x1b4   :  { %1387 = vst [vmem:[%s2884_s4 + $0x1b0] sm:$0xff] %v1285_v26  ;;  %v1300_v27 = vadd.f32 %v1935_v56, %v1807_v63 }
 0x1b5   :  { %v909_v28 = vpop.f32.mrf.mxu0 }
 0x1b6   :  { %1390 = vst [vmem:[%s2884_s4 + $0x1c8] sm:$0xff] %v1300_v27  ;;  %v1295_v30 = vadd.f32 %v1294_v58, %v909_v28 }
 0x1b7   :  { %v1810_v2 = vpop.f32.mrf.mxu0 }
 0x1b8   :  { %1389 = vst [vmem:[%s2884_s4 + $0x1c0] sm:$0xff] %v1295_v30  ;;  %v1310_v31 = vadd.f32 %v1938_v60, %v1810_v2 }
 0x1b9   :  { %v919_v32 = vpop.f32.mrf.mxu0 }
 0x1ba   :  { %1392 = vst [vmem:[%s2884_s4 + $0x1d8] sm:$0xff] %v1310_v31  ;;  %v1305_v33 = vadd.f32 %v1304_v62, %v919_v32 }
 0x1bb   :  { %v1813_v4 = vpop.f32.mrf.mxu0 }
 0x1bc   :  { %1391 = vst [vmem:[%s2884_s4 + $0x1d0] sm:$0xff] %v1305_v33  ;;  %v1320_v35 = vadd.f32 %v1941_v0, %v1813_v4 }
 0x1bd   :  { %v929_v36 = vpop.f32.mrf.mxu0 }
 0x1be   :  { %1394 = vst [vmem:[%s2884_s4 + $0x1e8] sm:$0xff] %v1320_v35  ;;  %v1315_v37 = vadd.f32 %v1314_v3, %v929_v36 }
 0x1bf   :  { %v1816_v14 = vpop.f32.mrf.mxu0 }
 0x1c0   :  { %1393 = vst [vmem:[%s2884_s4 + $0x1e0] sm:$0xff] %v1315_v37  ;;  %v1330_v38 = vadd.f32 %v1944_v8, %v1816_v14 }
 0x1c1   :  { %v939_v19 = vpop.f32.mrf.mxu0 }
 0x1c2   :  { %1396 = vst [vmem:[%s2884_s4 + $0x1f8] sm:$0xff] %v1330_v38  ;;  %v1325_v41 = vadd.f32 %v1324_v40, %v939_v19 }
 0x1c4   :  { %1395 = vst [vmem:[%s2884_s4 + $0x1f0] sm:$0xff] %v1325_v41 }

</bundles_post_ra>
